<compile_context>
chip_gen: v7x
topology: tpu7x:2x2x1
jax: 0.10.0
libtpu: 0.0.40
codegen_flags: <defaults>
</compile_context>

<pallas_src>
import jax
import jax.numpy as jnp
from jax.experimental import pallas as pl
from jax.experimental.pallas import tpu as pltpu

K = 7            # SpatialAttention kernel size
PAD = K // 2     # 3
ROWS = 2 * K + 2 # 16 sublanes: {avg,max} x 7 vertical offsets, padded to 16


# ----------------------------------------------------------------------------
# Fused CA-gate + spatial-attention + residual + ReLU kernel
# ----------------------------------------------------------------------------
def _make_sa_gate_kernel(C, H, W):
    HW = H * W
    pow2_w = (W & (W - 1)) == 0
    w_shift = W.bit_length() - 1  # log2(W) when W is a power of two

    def kernel(w_ref, ca_ref, x_ref, res_ref, o_ref):
        # w_ref   : VMEM f32[16, 128]  SA conv weight; row 2*kh+c, col kw (rest zero)
        # ca_ref  : VMEM f32[1, C, 1]  channel-attention gate for this sample
        # x_ref   : VMEM f32[1, C, HW] bn2(conv2(...)) output (pre channel attention)
        # res_ref : VMEM f32[1, C, HW] residual branch (block input)
        # o_ref   : VMEM f32[1, C, HW] relu(sa * (ca * x) + residual)

        # Channel-attention gate fused into the prologue (saves one HBM round trip).
        x = x_ref[0].astype(jnp.float32) * ca_ref[0].astype(jnp.float32)   # (C, HW)

        # Channel mean / max (cross-sublane reductions -> XLU).
        avg = jnp.mean(x, axis=0, keepdims=True)      # (1, HW)
        mx = jnp.max(x, axis=0, keepdims=True)        # (1, HW)
        pair = jnp.concatenate([avg, mx], axis=0)     # (2, HW)

        # In-kernel row / column indices (no extra DMA'd index input).
        flat = jax.lax.broadcasted_iota(jnp.int32, (1, HW), 1)
        if pow2_w:
            col = flat & (W - 1)
            row = flat >> w_shift
        else:
            col = flat % W
            row = flat // W

        # Stack {avg,max} x 7 vertical offsets into sublanes: 6 rolls of (2,HW), row
        # masks (= zero padding in the height direction) applied once per dh.
        pieces = []
        for dh in range(-PAD, PAD + 1):
            t = pair if dh == 0 else pltpu.roll(pair, shift=(-dh * W) % HW, axis=1)
            if dh > 0:
                t = jnp.where(row < H - dh, t, 0.0)
            elif dh < 0:
                t = jnp.where(row >= -dh, t, 0.0)
            pieces.append(t)                       # global rows 2*(dh+PAD), 2*(dh+PAD)+1
        pieces.append(jnp.zeros((2, HW), jnp.float32))           # pad rows 14, 15
        stack = jnp.concatenate(pieces, axis=0)                  # (16, HW)

        # 7 horizontal offsets: roll the whole stack, mask columns that crossed a row
        # edge (= zero padding in the width direction), weighted accumulate with a
        # per-sublane weight column, then one cross-sublane reduce.
        wmat = w_ref[...]                                        # (16, 128)
        acc = jnp.zeros((ROWS, HW), jnp.float32)
        for j, dw in enumerate(range(-PAD, PAD + 1)):
            t = stack if dw == 0 else pltpu.roll(stack, shift=(-dw) % HW, axis=1)
            if dw > 0:
                t = jnp.where(col < W - dw, t, 0.0)
            elif dw < 0:
                t = jnp.where(col >= -dw, t, 0.0)
            acc = acc + t * wmat[:, j:j + 1]
        conv = jnp.sum(acc, axis=0, keepdims=True)               # (1, HW)

        attn = jax.nn.sigmoid(conv)                              # (1, HW)
        out = x * attn + res_ref[0].astype(jnp.float32)          # gate + residual
        o_ref[0] = jnp.maximum(out, 0.0).astype(o_ref.dtype)     # ReLU, lane-dense store

    return kernel


def spatial_attention_gate(x, ca, sa_weight, residual):
    """Fused CBAM tail:
        relu( (ca*x) * sigmoid(conv7x7(cat[mean_c(ca*x), max_c(ca*x)])) + residual )

    x, residual: f32[N, C, H, W];  ca: f32[N, C];  sa_weight: f32[1, 2, K, K]."""
    N, C, H, W = x.shape
    HW = H * W

    x3 = x.reshape(N, C, HW)
    r3 = residual.reshape(N, C, HW)
    ca3 = ca.astype(jnp.float32).reshape(N, C, 1)

    # Weight matrix matching the in-kernel sublane stack: row 2*kh + c, column kw,
    # zero-padded to a (16, 128)-aligned tile.
    w = sa_weight.astype(jnp.float32).reshape(2, K, K)
    w_rows = jnp.transpose(w, (1, 0, 2)).reshape(2 * K, K)       # [2*kh+c, kw]
    w_mat = jnp.zeros((ROWS, 128), jnp.float32).at[:2 * K, :K].set(w_rows)

    kernel = _make_sa_gate_kernel(C, H, W)

    # One sample per grid step (full C x HW block: the channel mean/max needs all of C).
    # TODO(synk): for production shapes (e.g. C=256, H=W=56) split into a two-pass scheme
    # (pass 1: attention map via the C reduction per spatial tile; pass 2: gate+residual
    # tiled freely over C) so blocks stay inside v7x's 64 MiB VMEM and each core gets
    # >=2 pipelined steps.
    out = pl.pallas_call(
        kernel,
        out_shape=jax.ShapeDtypeStruct((N, C, HW), x.dtype),
        grid=(N,),
        in_specs=[
            pl.BlockSpec((ROWS, 128), lambda b: (0, 0)),      # SA conv weights
            pl.BlockSpec((1, C, 1), lambda b: (b, 0, 0)),     # channel-attention gate
            pl.BlockSpec((1, C, HW), lambda b: (b, 0, 0)),    # activations (pre-CA)
            pl.BlockSpec((1, C, HW), lambda b: (b, 0, 0)),    # residual
        ],
        out_specs=pl.BlockSpec((1, C, HW), lambda b: (b, 0, 0)),
        compiler_params=pltpu.CompilerParams(dimension_semantics=("parallel",)),
    )(w_mat, ca3, x3, r3)
    return out.reshape(N, C, H, W)


# ----------------------------------------------------------------------------
# Rest of BasicBlock_CBAM (plain JAX)
# ----------------------------------------------------------------------------
def conv3x3_nchw(x, w, stride=1):
    return jax.lax.conv_general_dilated(
        x, w, window_strides=(stride, stride), padding=((1, 1), (1, 1)),
        dimension_numbers=("NCHW", "OIHW", "NCHW"))


def batchnorm_eval(x, gamma, beta, mean, var, eps=1e-5):
    scale = gamma / jnp.sqrt(var + eps)
    shift = beta - mean * scale
    return x * scale[None, :, None, None] + shift[None, :, None, None]


def channel_attention(x, w1, w2):
    """CBAM ChannelAttention: sigmoid(fc(avgpool(x)) + fc(maxpool(x))) -> (N, C)."""
    avg = jnp.mean(x, axis=(2, 3))      # (N, C)
    mx = jnp.max(x, axis=(2, 3))        # (N, C)

    def fc(v):
        return jnp.maximum(v @ w1.T, 0.0) @ w2.T

    return jax.nn.sigmoid(fc(avg) + fc(mx))      # (N, C)


def _trunk_to_bn2(params, x):
    out = conv3x3_nchw(x, params["conv1_w"])
    out = batchnorm_eval(out, *params["bn1"])
    out = jnp.maximum(out, 0.0)
    out = conv3x3_nchw(out, params["conv2_w"])
    out = batchnorm_eval(out, *params["bn2"])
    return out


def basic_block_cbam_forward(params, x):
    """BasicBlock_CBAM.forward (stride=1, downsample=None, eval-mode BatchNorm)."""
    # TODO(synk): conv3x3 / BatchNorm / ChannelAttention MLP stay on XLA; the CA gate,
    # spatial attention, residual add and ReLU run in the Pallas kernel.
    residual = x
    out = _trunk_to_bn2(params, x)
    ca = channel_attention(out, params["ca_w1"], params["ca_w2"])   # (N, C)
    return spatial_attention_gate(out, ca, params["sa_w"], residual)


# ----------------------------------------------------------------------------
# Pure-JAX reference for verification
# ----------------------------------------------------------------------------
def _sa_map_ref(x, w):
    avg = jnp.mean(x, axis=1, keepdims=True)
    mx = jnp.max(x, axis=1, keepdims=True)
    cat = jnp.concatenate([avg, mx], axis=1)
    y = jax.lax.conv_general_dilated(
        cat, w, window_strides=(1, 1), padding=((PAD, PAD), (PAD, PAD)),
        dimension_numbers=("NCHW", "OIHW", "NCHW"),
        precision=jax.lax.Precision.HIGHEST)
    return jax.nn.sigmoid(y)


def basic_block_cbam_ref(params, x):
    residual = x
    out = _trunk_to_bn2(params, x)
    ca = channel_attention(out, params["ca_w1"], params["ca_w2"])[:, :, None, None]
    out = out * ca
    out = out * _sa_map_ref(out, params["sa_w"])
    return jnp.maximum(out + residual, 0.0)


if __name__ == "__main__":
    key = jax.random.PRNGKey(0)
    ks = jax.random.split(key, 16)

    # inplanes == planes so the identity residual applies (downsample=None, stride=1);
    # planes is a multiple of 16 because ChannelAttention uses reduction ratio 16.
    N, C, H, W = 2, 32, 16, 16

    x = jax.random.normal(ks[0], (N, C, H, W), dtype=jnp.float32)

    conv_std = (2.0 / (C * 9)) ** 0.5
    sa_bound = 1.0 / (2 * K * K) ** 0.5
    params = {
        "conv1_w": jax.random.normal(ks[1], (C, C, 3, 3), jnp.float32) * conv_std,
        "conv2_w": jax.random.normal(ks[2], (C, C, 3, 3), jnp.float32) * conv_std,
        "bn1": (jax.random.uniform(ks[3], (C,), minval=0.5, maxval=1.5),
                jax.random.normal(ks[4], (C,)) * 0.1,
                jax.random.normal(ks[5], (C,)) * 0.1,
                jax.random.uniform(ks[6], (C,), minval=0.5, maxval=1.5)),
        "bn2": (jax.random.uniform(ks[7], (C,), minval=0.5, maxval=1.5),
                jax.random.normal(ks[8], (C,)) * 0.1,
                jax.random.normal(ks[9], (C,)) * 0.1,
                jax.random.uniform(ks[10], (C,), minval=0.5, maxval=1.5)),
        "ca_w1": jax.random.normal(ks[11], (C // 16, C), jnp.float32) * (1.0 / C) ** 0.5,
        "ca_w2": jax.random.normal(ks[12], (C, C // 16), jnp.float32) * (16.0 / C) ** 0.5,
        "sa_w": jax.random.uniform(ks[13], (1, 2, K, K), minval=-sa_bound, maxval=sa_bound),
    }

    out = basic_block_cbam_forward(params, x)
    out = jax.block_until_ready(out)

    ref = basic_block_cbam_ref(params, x)
    assert out.shape == (N, C, H, W)
    max_err = float(jnp.max(jnp.abs(out - ref)))
    assert jnp.allclose(out, ref, atol=2e-4, rtol=2e-4), f"max err {max_err}"

    print("KERNEL_OK")
</pallas_src>

<mosaic_0001>
module attributes {stable_mosaic.version = 11 : i64} {
  func.func @kernel(%arg0: i32, %arg1: memref<16x128xf32, #tpu.memory_space<vmem>>, %arg2: memref<1x32x1xf32, #tpu.memory_space<vmem>>, %arg3: memref<1x32x256xf32, #tpu.memory_space<vmem>>, %arg4: memref<1x32x256xf32, #tpu.memory_space<vmem>>, %arg5: memref<1x32x256xf32, #tpu.memory_space<vmem>>) attributes {dimension_semantics = [#tpu.dimension_semantics<parallel>], iteration_bounds = array<i64: 2>, scalar_prefetch = 0 : i64, scratch_operands = 0 : i64, tpu.core_type = #tpu.core_type<tc>, window_params = [{pipeline_mode = #tpu.pipeline_mode<synchronous>, transform_indices = @transform_0, window_bounds = array<i64: 16, 128>}, {transform_indices = @transform_1, window_bounds = array<i64: 1, 32, 1>}, {transform_indices = @transform_2, window_bounds = array<i64: 1, 32, 256>}, {transform_indices = @transform_3, window_bounds = array<i64: 1, 32, 256>}, {transform_indices = @transform_4, window_bounds = array<i64: 1, 32, 256>}]} {
    %c0 = arith.constant 0 : index
    %c0_0 = arith.constant 0 : index
    %c0_1 = arith.constant 0 : index
    %0 = vector.load %arg3[%c0, %c0_0, %c0_1] : memref<1x32x256xf32, #tpu.memory_space<vmem>>, vector<1x32x256xf32>
    %1 = vector.shape_cast %0 : vector<1x32x256xf32> to vector<32x256xf32>
    %c0_2 = arith.constant 0 : index
    %c0_3 = arith.constant 0 : index
    %c0_4 = arith.constant 0 : index
    %2 = vector.load %arg2[%c0_2, %c0_3, %c0_4] : memref<1x32x1xf32, #tpu.memory_space<vmem>>, vector<1x32x1xf32>
    %3 = vector.shape_cast %2 : vector<1x32x1xf32> to vector<32x1xf32>
    %4 = vector.broadcast %3 : vector<32x1xf32> to vector<32x256xf32>
    %5 = arith.mulf %1, %4 : vector<32x256xf32>
    %cst = arith.constant dense<0.000000e+00> : vector<256xf32>
    %6 = vector.multi_reduction <add>, %5, %cst [0] : vector<32x256xf32> to vector<256xf32>
    %7 = vector.shape_cast %6 : vector<256xf32> to vector<1x256xf32>
    %cst_5 = arith.constant 3.200000e+01 : f32
    %8 = vector.broadcast %cst_5 : f32 to vector<1x256xf32>
    %9 = arith.divf %7, %8 : vector<1x256xf32>
    %cst_6 = arith.constant dense<0xFF800000> : vector<256xf32>
    %10 = vector.multi_reduction <maximumf>, %5, %cst_6 [0] : vector<32x256xf32> to vector<256xf32>
    %11 = vector.shape_cast %10 : vector<256xf32> to vector<1x256xf32>
    %12 = tpu.concatenate %9, %11 in 0 : vector<1x256xf32>, vector<1x256xf32> -> vector<2x256xf32>
    %13 = tpu.iota {dimensions = array<i32: 1>} : vector<1x256xi32>
    %c15_i32 = arith.constant 15 : i32
    %14 = vector.broadcast %c15_i32 : i32 to vector<1x256xi32>
    %15 = arith.andi %13, %14 : vector<1x256xi32>
    %c4_i32 = arith.constant 4 : i32
    %16 = vector.broadcast %c4_i32 : i32 to vector<1x256xi32>
    %17 = arith.shrsi %13, %16 : vector<1x256xi32>
    %c48_i32 = arith.constant 48 : i32
    %18 = tpu.dynamic_rotate %12 by %c48_i32 dim 1 : vector<2x256xf32>, i32 -> vector<2x256xf32>
    %c3_i32 = arith.constant 3 : i32
    %19 = vector.broadcast %c3_i32 : i32 to vector<1x256xi32>
    %20 = arith.cmpi sge, %17, %19 : vector<1x256xi32>
    %cst_7 = arith.constant 0.000000e+00 : f32
    %21 = vector.shape_cast %20 : vector<1x256xi1> to vector<1x256xi1>
    %22 = vector.broadcast %21 : vector<1x256xi1> to vector<2x256xi1>
    %23 = vector.broadcast %cst_7 : f32 to vector<2x256xf32>
    %24 = arith.select %22, %18, %23 : vector<2x256xi1>, vector<2x256xf32>
    %c32_i32 = arith.constant 32 : i32
    %25 = tpu.dynamic_rotate %12 by %c32_i32 dim 1 : vector<2x256xf32>, i32 -> vector<2x256xf32>
    %c2_i32 = arith.constant 2 : i32
    %26 = vector.broadcast %c2_i32 : i32 to vector<1x256xi32>
    %27 = arith.cmpi sge, %17, %26 : vector<1x256xi32>
    %cst_8 = arith.constant 0.000000e+00 : f32
    %28 = vector.shape_cast %27 : vector<1x256xi1> to vector<1x256xi1>
    %29 = vector.broadcast %28 : vector<1x256xi1> to vector<2x256xi1>
    %30 = vector.broadcast %cst_8 : f32 to vector<2x256xf32>
    %31 = arith.select %29, %25, %30 : vector<2x256xi1>, vector<2x256xf32>
    %c16_i32 = arith.constant 16 : i32
    %32 = tpu.dynamic_rotate %12 by %c16_i32 dim 1 : vector<2x256xf32>, i32 -> vector<2x256xf32>
    %c1_i32 = arith.constant 1 : i32
    %33 = vector.broadcast %c1_i32 : i32 to vector<1x256xi32>
    %34 = arith.cmpi sge, %17, %33 : vector<1x256xi32>
    %cst_9 = arith.constant 0.000000e+00 : f32
    %35 = vector.shape_cast %34 : vector<1x256xi1> to vector<1x256xi1>
    %36 = vector.broadcast %35 : vector<1x256xi1> to vector<2x256xi1>
    %37 = vector.broadcast %cst_9 : f32 to vector<2x256xf32>
    %38 = arith.select %36, %32, %37 : vector<2x256xi1>, vector<2x256xf32>
    %c240_i32 = arith.constant 240 : i32
    %39 = tpu.dynamic_rotate %12 by %c240_i32 dim 1 : vector<2x256xf32>, i32 -> vector<2x256xf32>
    %c15_i32_10 = arith.constant 15 : i32
    %40 = vector.broadcast %c15_i32_10 : i32 to vector<1x256xi32>
    %41 = arith.cmpi slt, %17, %40 : vector<1x256xi32>
    %cst_11 = arith.constant 0.000000e+00 : f32
    %42 = vector.shape_cast %41 : vector<1x256xi1> to vector<1x256xi1>
    %43 = vector.broadcast %42 : vector<1x256xi1> to vector<2x256xi1>
    %44 = vector.broadcast %cst_11 : f32 to vector<2x256xf32>
    %45 = arith.select %43, %39, %44 : vector<2x256xi1>, vector<2x256xf32>
    %c224_i32 = arith.constant 224 : i32
    %46 = tpu.dynamic_rotate %12 by %c224_i32 dim 1 : vector<2x256xf32>, i32 -> vector<2x256xf32>
    %c14_i32 = arith.constant 14 : i32
    %47 = vector.broadcast %c14_i32 : i32 to vector<1x256xi32>
    %48 = arith.cmpi slt, %17, %47 : vector<1x256xi32>
    %cst_12 = arith.constant 0.000000e+00 : f32
    %49 = vector.shape_cast %48 : vector<1x256xi1> to vector<1x256xi1>
    %50 = vector.broadcast %49 : vector<1x256xi1> to vector<2x256xi1>
    %51 = vector.broadcast %cst_12 : f32 to vector<2x256xf32>
    %52 = arith.select %50, %46, %51 : vector<2x256xi1>, vector<2x256xf32>
    %c208_i32 = arith.constant 208 : i32
    %53 = tpu.dynamic_rotate %12 by %c208_i32 dim 1 : vector<2x256xf32>, i32 -> vector<2x256xf32>
    %c13_i32 = arith.constant 13 : i32
    %54 = vector.broadcast %c13_i32 : i32 to vector<1x256xi32>
    %55 = arith.cmpi slt, %17, %54 : vector<1x256xi32>
    %cst_13 = arith.constant 0.000000e+00 : f32
    %56 = vector.shape_cast %55 : vector<1x256xi1> to vector<1x256xi1>
    %57 = vector.broadcast %56 : vector<1x256xi1> to vector<2x256xi1>
    %58 = vector.broadcast %cst_13 : f32 to vector<2x256xf32>
    %59 = arith.select %57, %53, %58 : vector<2x256xi1>, vector<2x256xf32>
    %cst_14 = arith.constant 0.000000e+00 : f32
    %60 = vector.broadcast %cst_14 : f32 to vector<2x256xf32>
    %61 = tpu.concatenate %24, %31, %38, %12, %45, %52, %59, %60 in 0 : vector<2x256xf32>, vector<2x256xf32>, vector<2x256xf32>, vector<2x256xf32>, vector<2x256xf32>, vector<2x256xf32>, vector<2x256xf32>, vector<2x256xf32> -> vector<16x256xf32>
    %c0_15 = arith.constant 0 : index
    %c0_16 = arith.constant 0 : index
    %62 = vector.load %arg1[%c0_15, %c0_16] : memref<16x128xf32, #tpu.memory_space<vmem>>, vector<16x128xf32>
    %cst_17 = arith.constant 0.000000e+00 : f32
    %63 = vector.broadcast %cst_17 : f32 to vector<16x256xf32>
    %c3_i32_18 = arith.constant 3 : i32
    %64 = tpu.dynamic_rotate %61 by %c3_i32_18 dim 1 : vector<16x256xf32>, i32 -> vector<16x256xf32>
    %c3_i32_19 = arith.constant 3 : i32
    %65 = vector.broadcast %c3_i32_19 : i32 to vector<1x256xi32>
    %66 = arith.cmpi sge, %15, %65 : vector<1x256xi32>
    %cst_20 = arith.constant 0.000000e+00 : f32
    %67 = vector.shape_cast %66 : vector<1x256xi1> to vector<1x256xi1>
    %68 = vector.broadcast %67 : vector<1x256xi1> to vector<16x256xi1>
    %69 = vector.broadcast %cst_20 : f32 to vector<16x256xf32>
    %70 = arith.select %68, %64, %69 : vector<16x256xi1>, vector<16x256xf32>
    %71 = vector.extract_strided_slice %62 {offsets = [0, 0], sizes = [16, 1], strides = [1, 1]} : vector<16x128xf32> to vector<16x1xf32>
    %72 = vector.broadcast %71 : vector<16x1xf32> to vector<16x256xf32>
    %73 = arith.mulf %70, %72 : vector<16x256xf32>
    %74 = arith.addf %63, %73 : vector<16x256xf32>
    %c2_i32_21 = arith.constant 2 : i32
    %75 = tpu.dynamic_rotate %61 by %c2_i32_21 dim 1 : vector<16x256xf32>, i32 -> vector<16x256xf32>
    %c2_i32_22 = arith.constant 2 : i32
    %76 = vector.broadcast %c2_i32_22 : i32 to vector<1x256xi32>
    %77 = arith.cmpi sge, %15, %76 : vector<1x256xi32>
    %cst_23 = arith.constant 0.000000e+00 : f32
    %78 = vector.shape_cast %77 : vector<1x256xi1> to vector<1x256xi1>
    %79 = vector.broadcast %78 : vector<1x256xi1> to vector<16x256xi1>
    %80 = vector.broadcast %cst_23 : f32 to vector<16x256xf32>
    %81 = arith.select %79, %75, %80 : vector<16x256xi1>, vector<16x256xf32>
    %82 = vector.extract_strided_slice %62 {offsets = [0, 1], sizes = [16, 1], strides = [1, 1]} : vector<16x128xf32> to vector<16x1xf32>
    %83 = vector.broadcast %82 : vector<16x1xf32> to vector<16x256xf32>
    %84 = arith.mulf %81, %83 : vector<16x256xf32>
    %85 = arith.addf %74, %84 : vector<16x256xf32>
    %c1_i32_24 = arith.constant 1 : i32
    %86 = tpu.dynamic_rotate %61 by %c1_i32_24 dim 1 : vector<16x256xf32>, i32 -> vector<16x256xf32>
    %c1_i32_25 = arith.constant 1 : i32
    %87 = vector.broadcast %c1_i32_25 : i32 to vector<1x256xi32>
    %88 = arith.cmpi sge, %15, %87 : vector<1x256xi32>
    %cst_26 = arith.constant 0.000000e+00 : f32
    %89 = vector.shape_cast %88 : vector<1x256xi1> to vector<1x256xi1>
    %90 = vector.broadcast %89 : vector<1x256xi1> to vector<16x256xi1>
    %91 = vector.broadcast %cst_26 : f32 to vector<16x256xf32>
    %92 = arith.select %90, %86, %91 : vector<16x256xi1>, vector<16x256xf32>
    %93 = vector.extract_strided_slice %62 {offsets = [0, 2], sizes = [16, 1], strides = [1, 1]} : vector<16x128xf32> to vector<16x1xf32>
    %94 = vector.broadcast %93 : vector<16x1xf32> to vector<16x256xf32>
    %95 = arith.mulf %92, %94 : vector<16x256xf32>
    %96 = arith.addf %85, %95 : vector<16x256xf32>
    %97 = vector.extract_strided_slice %62 {offsets = [0, 3], sizes = [16, 1], strides = [1, 1]} : vector<16x128xf32> to vector<16x1xf32>
    %98 = vector.broadcast %97 : vector<16x1xf32> to vector<16x256xf32>
    %99 = arith.mulf %61, %98 : vector<16x256xf32>
    %100 = arith.addf %96, %99 : vector<16x256xf32>
    %c255_i32 = arith.constant 255 : i32
    %101 = tpu.dynamic_rotate %61 by %c255_i32 dim 1 : vector<16x256xf32>, i32 -> vector<16x256xf32>
    %c15_i32_27 = arith.constant 15 : i32
    %102 = vector.broadcast %c15_i32_27 : i32 to vector<1x256xi32>
    %103 = arith.cmpi slt, %15, %102 : vector<1x256xi32>
    %cst_28 = arith.constant 0.000000e+00 : f32
    %104 = vector.shape_cast %103 : vector<1x256xi1> to vector<1x256xi1>
    %105 = vector.broadcast %104 : vector<1x256xi1> to vector<16x256xi1>
    %106 = vector.broadcast %cst_28 : f32 to vector<16x256xf32>
    %107 = arith.select %105, %101, %106 : vector<16x256xi1>, vector<16x256xf32>
    %108 = vector.extract_strided_slice %62 {offsets = [0, 4], sizes = [16, 1], strides = [1, 1]} : vector<16x128xf32> to vector<16x1xf32>
    %109 = vector.broadcast %108 : vector<16x1xf32> to vector<16x256xf32>
    %110 = arith.mulf %107, %109 : vector<16x256xf32>
    %111 = arith.addf %100, %110 : vector<16x256xf32>
    %c254_i32 = arith.constant 254 : i32
    %112 = tpu.dynamic_rotate %61 by %c254_i32 dim 1 : vector<16x256xf32>, i32 -> vector<16x256xf32>
    %c14_i32_29 = arith.constant 14 : i32
    %113 = vector.broadcast %c14_i32_29 : i32 to vector<1x256xi32>
    %114 = arith.cmpi slt, %15, %113 : vector<1x256xi32>
    %cst_30 = arith.constant 0.000000e+00 : f32
    %115 = vector.shape_cast %114 : vector<1x256xi1> to vector<1x256xi1>
    %116 = vector.broadcast %115 : vector<1x256xi1> to vector<16x256xi1>
    %117 = vector.broadcast %cst_30 : f32 to vector<16x256xf32>
    %118 = arith.select %116, %112, %117 : vector<16x256xi1>, vector<16x256xf32>
    %119 = vector.extract_strided_slice %62 {offsets = [0, 5], sizes = [16, 1], strides = [1, 1]} : vector<16x128xf32> to vector<16x1xf32>
    %120 = vector.broadcast %119 : vector<16x1xf32> to vector<16x256xf32>
    %121 = arith.mulf %118, %120 : vector<16x256xf32>
    %122 = arith.addf %111, %121 : vector<16x256xf32>
    %c253_i32 = arith.constant 253 : i32
    %123 = tpu.dynamic_rotate %61 by %c253_i32 dim 1 : vector<16x256xf32>, i32 -> vector<16x256xf32>
    %c13_i32_31 = arith.constant 13 : i32
    %124 = vector.broadcast %c13_i32_31 : i32 to vector<1x256xi32>
    %125 = arith.cmpi slt, %15, %124 : vector<1x256xi32>
    %cst_32 = arith.constant 0.000000e+00 : f32
    %126 = vector.shape_cast %125 : vector<1x256xi1> to vector<1x256xi1>
    %127 = vector.broadcast %126 : vector<1x256xi1> to vector<16x256xi1>
    %128 = vector.broadcast %cst_32 : f32 to vector<16x256xf32>
    %129 = arith.select %127, %123, %128 : vector<16x256xi1>, vector<16x256xf32>
    %130 = vector.extract_strided_slice %62 {offsets = [0, 6], sizes = [16, 1], strides = [1, 1]} : vector<16x128xf32> to vector<16x1xf32>
    %131 = vector.broadcast %130 : vector<16x1xf32> to vector<16x256xf32>
    %132 = arith.mulf %129, %131 : vector<16x256xf32>
    %133 = arith.addf %122, %132 : vector<16x256xf32>
    %cst_33 = arith.constant dense<0.000000e+00> : vector<256xf32>
    %134 = vector.multi_reduction <add>, %133, %cst_33 [0] : vector<16x256xf32> to vector<256xf32>
    %135 = vector.shape_cast %134 : vector<256xf32> to vector<1x256xf32>
    %136 = arith.negf %135 : vector<1x256xf32>
    %137 = math.exp %136 : vector<1x256xf32>
    %cst_34 = arith.constant 1.000000e+00 : f32
    %138 = vector.broadcast %cst_34 : f32 to vector<1x256xf32>
    %139 = arith.addf %138, %137 : vector<1x256xf32>
    %140 = arith.divf %138, %139 : vector<1x256xf32>
    %141 = vector.broadcast %140 : vector<1x256xf32> to vector<32x256xf32>
    %142 = arith.mulf %5, %141 : vector<32x256xf32>
    %c0_35 = arith.constant 0 : index
    %c0_36 = arith.constant 0 : index
    %c0_37 = arith.constant 0 : index
    %143 = vector.load %arg4[%c0_35, %c0_36, %c0_37] : memref<1x32x256xf32, #tpu.memory_space<vmem>>, vector<1x32x256xf32>
    %144 = vector.shape_cast %143 : vector<1x32x256xf32> to vector<32x256xf32>
    %145 = arith.addf %142, %144 : vector<32x256xf32>
    %cst_38 = arith.constant 0.000000e+00 : f32
    %146 = vector.broadcast %cst_38 : f32 to vector<32x256xf32>
    %147 = arith.maximumf %145, %146 : vector<32x256xf32>
    %c0_39 = arith.constant 0 : index
    %c0_40 = arith.constant 0 : index
    %c0_41 = arith.constant 0 : index
    %148 = vector.load %arg5[%c0_39, %c0_40, %c0_41] : memref<1x32x256xf32, #tpu.memory_space<vmem>>, vector<1x32x256xf32>
    %149 = vector.shape_cast %148 : vector<1x32x256xf32> to vector<32x256xf32>
    %150 = vector.shape_cast %147 : vector<32x256xf32> to vector<1x32x256xf32>
    tpu.vector_store %arg5[%c0_39, %c0_40, %c0_41], %150 {strides = array<i32>} : memref<1x32x256xf32, #tpu.memory_space<vmem>>, vector<1x32x256xf32>,
    return
  }
  func.func @transform_0(%arg0: i32) -> (i32, i32) {
    %c0_i32 = arith.constant 0 : i32
    %c0_i32_0 = arith.constant 0 : i32
    %c0_i32_1 = arith.constant 0 : i32
    return %c0_i32, %c0_i32_0 : i32, i32
  }
  func.func @transform_1(%arg0: i32) -> (i32, i32, i32) {
    %c0_i32 = arith.constant 0 : i32
    %c0_i32_0 = arith.constant 0 : i32
    %c0_i32_1 = arith.constant 0 : i32
    return %arg0, %c0_i32, %c0_i32_0 : i32, i32, i32
  }
  func.func @transform_2(%arg0: i32) -> (i32, i32, i32) {
    %c0_i32 = arith.constant 0 : i32
    %c0_i32_0 = arith.constant 0 : i32
    %c0_i32_1 = arith.constant 0 : i32
    return %arg0, %c0_i32, %c0_i32_0 : i32, i32, i32
  }
  func.func @transform_3(%arg0: i32) -> (i32, i32, i32) {
    %c0_i32 = arith.constant 0 : i32
    %c0_i32_0 = arith.constant 0 : i32
    %c0_i32_1 = arith.constant 0 : i32
    return %arg0, %c0_i32, %c0_i32_0 : i32, i32, i32
  }
  func.func @transform_4(%arg0: i32) -> (i32, i32, i32) {
    %c0_i32 = arith.constant 0 : i32
    %c0_i32_0 = arith.constant 0 : i32
    %c0_i32_1 = arith.constant 0 : i32
    return %arg0, %c0_i32, %c0_i32_0 : i32, i32, i32
  }
}

</mosaic_0001>

<bundles_post_ra>
// kernel: tpu_custom_call.1
= control target key start
LH: loop header
LB: loop body
LE: loop exit
PB: predicated region body
PF: predicated region fallthrough
CT: control target
= control target key end

     0   :  { %9 = vsyncpa [#allocation3], 0  ;;  %s1832_s0 = inlined_call_operand.vmem [shape: f32[16,128], index: 0, kind: input, shape index: {}]   ;;  %s1833_s1 = inlined_call_operand.vmem [shape: f32[2,32,1], index: 1, kind: input, shape index: {}]   ;;  %s1834_s2 = inlined_call_operand.hbm [shape: f32[2,32,256], index: 2, kind: input, shape index: {}]   ;;  %s1835_s3 = inlined_call_operand.hbm [shape: f32[2,32,256], index: 3, kind: input, shape index: {}]   ;;  %s1836_s4 = inlined_call_operand.hbm [shape: f32[2,32,256], index: 4, kind: output, shape index: {}]  }
   0x1   :  { %11 = vsyncpa [#allocation3 + $0x1], 0 }
   0x2   :  { %12 = vsyncpa [#allocation6], 0 }
   0x3   :  { %14 = vsyncpa [#allocation6 + $0x1], 0 }
   0x4   :  { %15 = vsyncpa [#allocation4], 0 }
   0x5   :  { %17 = vsyncpa [#allocation4 + $0x1], 0  ;;  %s1244_s15 = smov 0   ;;  %s1246_s16 = smov 0  }
   0x6   :  { %s1248_s17 = smov 0   ;;  %s1250_s18 = smov 0  }
   0x7 LB: > { %s1265_s19 = sadd.s32 4294967295, %s1192_s18   ;;  %s942_s20 = sadd.s32 4294967294, %s1192_s18   ;;  %s1192_s18 = sphi %s1250_s18, %s1852_s18   ;;  %s1188_s17 = sphi %s1248_s17, %s1851_s17   ;;  %s1184_s16 = sphi %s1246_s16, %s1850_s16   ;;  %s1180_s15 = sphi %s1244_s15, %s1849_s15  }
   0x8   : > { %s1269_s21 = sadd.s32 1, %s1192_s18   ;;  %s77_s22 = sadd.s32 1, %s1188_s17 }
   0x9   : > { %s74_s23 = ssub.s32 %s1192_s18, %s1269_s21  ;;  %p84_p0 = scmp.ne.s32.totalorder %s1188_s17, %s1184_s16 }
   0xa   : > { %p75_p1 = scmp.eq.s32.totalorder %s74_s23, 0  ;;  %p85_p2 = scmp.eq.s32.totalorder %s1192_s18, 0 }
   0xb   : > { %p90_p3 = scmp.ne.s32.totalorder %s1184_s16, %s1180_s15  ;;  %p91_p4 = scmp.eq.s32.totalorder %s1265_s19, 0 }
   0xc   : > { %s1281_s24 = scalar_select %p75_p1, %s1188_s17, %s77_s22  }
   0xd   : > { %p1283_p5 = por %p85_p2, %p84_p0  ;;  %p1287_p6 = por %p91_p4, %p90_p3 }
   0xe   : > { %p140_p7 = scmp.eq.s32.totalorder %s1265_s19, 1  ;;  %p146_p8 = scmp.eq.s32.totalorder %s942_s20, 1 }
   0xf   : > { %s1840_s26 = scalar_select %p1287_p6, 1, 0 }
  0x10   : > { %p985_p10 = scmp.lt.s32.totalorder %s1192_s18, 2  ;;  %p1294_p11 = por %p140_p7, %p84_p0 }
  0x11   : > { %p1298_p12 = por %p146_p8, %p90_p3  ;;  %s1303_s29 = sand.u32 1, %s1188_s17  }
  0x12   : > { %s1841_s27 = scalar_select %p1294_p11, 1, 0 }
  0x13   : > { %s1842_s28 = scalar_select %p1298_p12, 1, 0 }
  0x14   : > { %s964_s30 = sshll.u32 %s1192_s18, 10  ;;  %s945_s5 = sshll.u32 %s1303_s29, 6 }
  0x15   : > { %s1312_s8 = scalar_lea.hbm %s1834_s2, %s964_s30  ;;  %s181_s9 = scalar_lea.vmem [#allocation2], %s945_s5 }
  0x16   : > { %s188_s10 = sshll.u32 %s181_s9, 4  ;;  %p1318_p13 = pnand %p985_p10, %p1283_p5  ;;  %s1322_s10 = int_to_ptr.vmem [resolvable:$true] %s188_s10 }
  0x17   : > { %s178_s12 = scalar_lea.sflag [#allocation3], %s1303_s29  ;;  %s1062_s13 = scalar_lea.hbm %s1312_s8, 1024 }
  0x18   : > { %p1063_p0 = scmp.ne.s32.totalorder %s1312_s8, %s1062_s13  ;;  %p1064_p1 = pneg %p1318_p13 }
  0x19   : > { %s1067_s22 = scalar_lea.hbm %s1834_s2, 2048  ;;  %p1068_p4 = scmp.lt.u32.totalorder %s1312_s8, %s1834_s2 }
  0x1a   : > { %p1065_p2 = pnand %p1064_p1, %p1063_p0  ;;  %p1069_p5 = scmp.lt.u32.totalorder %s1067_s22, %s1062_s13 }
  0x1b   : > { %p1071_p8 = scmp.lt.u32.totalorder %s1062_s13, %s1312_s8 }
  0x1c   : > { %p1066_p3 = pneg %p1065_p2  ;;  %p1070_p7 = por %p1069_p5, %p1068_p4 }
  0x1e   : > { %p1072_p10 = por %p1071_p8, %p1070_p7 }
  0x20   : > { %p1073_p9 = pnand %p1072_p10, %p1066_p3 }
  0x22   : > { %1076 = shalt.err (!%p1073_p9)
}
  0x23   : > { %s1077_s6 = scalar_lea.vmem %s1322_s10, 1024  ;;  %s1194_s7 = smov [#allocation2]  }
  0x24   : > { %p1078_p0 = scmp.ne.s32.totalorder %s1322_s10, %s1077_s6  ;;  %s1082_s9 = sshll.u32 %s1194_s7, 4  ;;  %s1083_s9 = int_to_ptr.vmem [resolvable:$false] %s1082_s9 }
  0x25   : > { %s1084_s14 = scalar_lea.vmem %s1083_s9, 2048  ;;  %p1085_p11 = scmp.lt.s32.totalorder %s1322_s10, %s1083_s9 }
  0x26   : > { %p1080_p2 = pnand %p1078_p0, %p1064_p1  ;;  %p1086_p4 = scmp.lt.s32.totalorder %s1084_s14, %s1077_s6 }
  0x28   : > { %p1081_p12 = pneg %p1080_p2  ;;  %p1087_p5 = por %p1086_p4, %p1085_p11 }
  0x2a   : > { %p1088_p7 = pnand %p1087_p5, %p1081_p12 }
  0x2c   : > { %1091 = shalt.err (!%p1088_p7)
}
  0x2d   : > { %s1195_s13 = smov 256   ;;  %s1196_s20 = smov 16  }
  0x2e   : > { %977 = dma.hbm_to_vmem [thread:$0]  (!%p1318_p13), %s1312_s8, 1024, %s1322_s10, %s178_s12, %s1195_s13, %s1195_s13, %s1196_s20  }
  0x2f   : > { %p951_p9 = scmp.ge.s32.totalorder %s1192_s18, 1  ;;  %p217_p11 = scmp.lt.s32.totalorder %s1192_s18, 3 }
  0x30   : > { %s1366_s6 = scalar_lea.hbm %s1835_s3, %s964_s30  ;;  %s202_s7 = scalar_lea.vmem [#allocation5], %s945_s5 }
  0x31   : > { %p1357_p12 = pnand %p951_p9, %p217_p11  ;;  %s209_s9 = sshll.u32 %s202_s7, 4  ;;  %s1370_s9 = int_to_ptr.vmem [resolvable:$true] %s209_s9 }
  0x32   : > { %s199_s8 = scalar_lea.sflag [#allocation6], %s1303_s29  ;;  %s1092_s10 = scalar_lea.hbm %s1366_s6, 1024 }
  0x33   : > { %p1093_p3 = scmp.ne.s32.totalorder %s1366_s6, %s1092_s10  ;;  %s1097_s30 = scalar_lea.hbm %s1835_s3, 2048 }
  0x34   : > { %p1098_p0 = scmp.lt.u32.totalorder %s1366_s6, %s1835_s3  ;;  %p1099_p2 = scmp.lt.u32.totalorder %s1097_s30, %s1092_s10 }
  0x35   : > { %p1095_p8 = pnand %p1093_p3, %p1064_p1  ;;  %p1101_p5 = scmp.lt.u32.totalorder %s1092_s10, %s1366_s6 }
  0x36   : > { %p1100_p4 = por %p1099_p2, %p1098_p0 }
  0x37   : > { %p1096_p10 = pneg %p1095_p8 }
  0x38   : > { %p1102_p7 = por %p1101_p5, %p1100_p4 }
  0x3a   : > { %p1103_p9 = pnand %p1102_p7, %p1096_p10 }
  0x3c   : > { %1106 = shalt.err (!%p1103_p9)
}
  0x3d   : > { %s1107_s5 = scalar_lea.vmem %s1370_s9, 1024  ;;  %s1197_s7 = smov [#allocation5]  }
  0x3e   : > { %p1108_p11 = scmp.ne.s32.totalorder %s1370_s9, %s1107_s5  ;;  %s1112_s12 = sshll.u32 %s1197_s7, 4  ;;  %s1113_s12 = int_to_ptr.vmem [resolvable:$false] %s1112_s12 }
  0x3f   : > { %s1114_s14 = scalar_lea.vmem %s1113_s12, 2048  ;;  %p1115_p6 = scmp.lt.s32.totalorder %s1370_s9, %s1113_s12 }
  0x40   : > { %p1110_p3 = pnand %p1108_p11, %p1064_p1  ;;  %p1116_p0 = scmp.lt.s32.totalorder %s1114_s14, %s1107_s5 }
  0x42   : > { %p1111_p8 = pneg %p1110_p3  ;;  %p1117_p2 = por %p1116_p0, %p1115_p6 }
  0x44   : > { %p1118_p4 = pnand %p1117_p2, %p1111_p8 }
  0x46   : > { %1121 = shalt.err (!%p1118_p4)
}
  0x47   : > { %980 = dma.hbm_to_vmem [thread:$0]  (!%p1318_p13), %s1366_s6, 1024, %s1370_s9, %s199_s8, %s1195_s13, %s1195_s13, %s1196_s20  }
  0x48   : > { %221 = sbr.rel (%p1357_p12) target bundleno = 630 (0x276), region = 36  ;;  %s1404_s10 = sand.u32 (!%p1357_p12), 1, %s1184_s16  }
  0x49   : > { %s1407_s30 = sshll.u32 (!%p1357_p12), %s1404_s10, 6  ;;  %s224_s11 = scalar_lea.sflag (!%p1357_p12), [#allocation3], %s1404_s10 }
  0x4a   : > { %s1411_s23 = scalar_lea.vmem (!%p1357_p12), [#allocation2], %s1407_s30  ;;  %p1845_p6 = scmp.ne.s32.totalorder (!%p1357_p12), %s1840_s26, 0 }
  0x4f   : > { %1167 = dma.done.wait (%p1845_p6), %s224_s11, 1024  }
  0x50   : > { %1169 = vsyncadd (%p1845_p6), %s224_s11, 4294966272  ;;  %s233_s29 = scalar_lea.sflag [#allocation6], %s1404_s10  ;;  %s1419_s13 = scalar_lea.vmem [#allocation5], %s1407_s30 }
  0x51   : > { %1171 = dma.done.wait (%p1845_p6), %s233_s29, 1024  }
  0x52   : > { %1173 = vsyncadd (%p1845_p6), %s233_s29, 4294966272  ;;  %p271_p13 = scmp.lt.s32.totalorder %s1265_s19, 1  ;;  %v1198_v0 = vmov 0   ;;  %v1433_v5 = vld [vmem:[%s1832_s0 + $0x8] sm:$0xff]  ;;  %v1438_v6 = vld [vmem:[%s1832_s0] sm:$0xff]  ;;  %v1199_v7 = vmov 1  }
  0x53   : > { %1042 = vset.pattern.permute.xlu1 %v1198_v0  ;;  %1041 = vset.pattern.permute.xlu0 %v1198_v0  ;;  %v280_v8 = vld [vmem:[%s1411_s23 + $0x20] sm:$0xff]  ;;  %v281_v9 = vld [vmem:[%s1411_s23 + $0x28] sm:$0xff]  ;;  %v282_v14 = vld [vmem:[%s1411_s23 + $0x30] sm:$0xff]  ;;  %vm355_vm0 = vcmask 1040384   ;;  %s1200_s12 = smov 32   ;;  %s1201_s14 = smov 96  }
  0x54   : > { %s272_s20 = scalar_select %p271_p13, %s1265_s19, 1  ;;  %v276_v10 = vld [vmem:[%s1411_s23] sm:$0xff]  ;;  %v277_v11 = vld [vmem:[%s1411_s23 + $0x8] sm:$0xff]  ;;  %v283_v19 = vld [vmem:[%s1411_s23 + $0x38] sm:$0xff]  ;;  %vm485_vm10 = vcmask 1041408   ;;  %vm488_vm11 = vcmask 1043456  }
  0x55   : > { %v278_v20 = vld [vmem:[%s1411_s23 + $0x10] sm:$0xff]  ;;  %v279_v21 = vld [vmem:[%s1411_s23 + $0x18] sm:$0xff]  ;;  %s1202_s11 = smov 16   ;;  %s1203_s23 = smov 80   ;;  %vm491_vm12 = vcmask 1045504  }
  0x56   : > { %s966_s22 = sshll.u32 %s272_s20, 5  ;;  %s1204_s29 = smov 48  }
  0x57   : > { %s275_s8 = scalar_lea.vmem %s1833_s1, %s966_s22  ;;  %s1205_s20 = smov 112  }
  0x58   : > { %v286_v1 = vld [vmem:[%s275_s8 + $0x10] sm:$0xff]  ;;  %v284_v2 = vld [vmem:[%s275_s8] sm:$0xff]  ;;  %v287_v3 = vld [vmem:[%s275_s8 + $0x18] sm:$0xff]  ;;  %s1211_s22 = smov 3   ;;  %s1212_s6 = smov 2  }
  0x59   : > { %300 = vperm.xlu1 %1042, %v286_v1   ;;  %290 = vperm.xlu0 %1041, %v284_v2   ;;  %v285_v4 = vld [vmem:[%s275_s8 + $0x8] sm:$0xff]  ;;  %s1213_s9 = smov 1   ;;  %s1214_s8 = smov 127  }
  0x5a   : > { %s1215_s26 = smov 126   ;;  %s1216_s25 = smov 125  }
  0x5b   : > { %s967_s5 = sshll.u32 %s1265_s19, 10  ;;  %s270_s7 = scalar_lea.vmem [#allocation7], %s1407_s30 }
  0x5c   : > { %s821_s19 = scalar_lea.sflag [#allocation4], %s1404_s10  ;;  %p1846_p12 = scmp.ne.s32.totalorder %s1841_s27, 0 }
  0x5d   : > { %305 = vperm.xlu1 %1042, %v287_v3   ;;  %295 = vperm.xlu0 %1041, %v285_v4   ;;  %v1206_v4 = vmov 2  }
  0x61   : > { %532 = vperm.xlu1 %1042, %v1433_v5   ;;  %527 = vperm.xlu0 %1041, %v1438_v6  }
  0x65   : > { %1044 = vset.pattern.permute.xlu1 %v1199_v7  ;;  %1043 = vset.pattern.permute.xlu0 %v1199_v7  ;;  %v1207_v7 = vmov 3  }
  0xd8   : > { %v301_v12 = vpop.permute.xlu1 %300  ;;  %v291_v13 = vpop.permute.xlu0 %290 }
  0xd9   : > { %v1447_v15 = vmul.f32 %v301_v12, %v280_v8  ;;  %v1449_v16 = vmul.f32 %v301_v12, %v281_v9  ;;  %v1451_v17 = vmul.f32 %v291_v13, %v276_v10  ;;  %v1453_v18 = vmul.f32 %v291_v13, %v277_v11 }
  0xda   : > { %v1208_v8 = vmov 4   ;;  %v1209_v9 = vmov 5   ;;  %v1210_v10 = vmov 6   ;;  %v358_v11 = vlaneseq }
  0xdb   : > { %v337_v28 = vmax.f32 %v1451_v17, %v1447_v15  ;;  %v346_v29 = vmax.f32 %v1453_v18, %v1449_v16 }
  0xdc   : > { %v306_v22 = vpop.permute.xlu1 %305  ;;  %v296_v23 = vpop.permute.xlu0 %295 }
  0xdd   : > { %v1458_v24 = vmul.f32 %v306_v22, %v282_v14  ;;  %v1460_v25 = vmul.f32 %v306_v22, %v283_v19  ;;  %v1462_v26 = vmul.f32 %v296_v23, %v278_v20  ;;  %v1464_v27 = vmul.f32 %v296_v23, %v279_v21 }
  0xde   : > { %v1516_v14 = vand.u32 127, %v358_v11 }
  0xdf   : > { %v316_v30 = vadd.f32 %v1462_v26, %v1451_v17  ;;  %v325_v31 = vadd.f32 %v1464_v27, %v1453_v18  ;;  %v338_v32 = vmax.f32 %v1462_v26, %v1458_v24  ;;  %v347_v33 = vmax.f32 %v1464_v27, %v1460_v25 }
  0xe0   : > { %v1512_v12 = vpop.permute.xlu1 %532  ;;  %v1514_v13 = vpop.permute.xlu0 %527  ;;  %v1519_v21 = vadd.s32 128, %v1516_v14  ;;  %vm384_vm1 = vcmp.lt.s32.totalorder %v1516_v14, 32  ;;  %vm399_vm2 = vcmp.lt.s32.totalorder %v1516_v14, 16  ;;  %vm369_vm7 = vcmp.lt.s32.totalorder %v1516_v14, 48 }
  0xe1   : > { %v317_v34 = vadd.f32 %v316_v30, %v1447_v15  ;;  %v326_v35 = vadd.f32 %v325_v31, %v1449_v16  ;;  %v339_v36 = vmax.f32 %v337_v28, %v338_v32  ;;  %v348_v37 = vmax.f32 %v346_v29, %v347_v33 }
  0xe2   : > { %v1522_v28 = vshra.s32 %v1516_v14, 4  ;;  %vm429_vm13 = vcmp.lt.s32.totalorder %v1516_v14, 96  ;;  %vm444_vm14 = vcmp.lt.s32.totalorder %v1516_v14, 80 }
  0xe3   : > { %v318_v38 = vadd.f32 %v317_v34, %v1458_v24  ;;  %v327_v39 = vadd.f32 %v326_v35, %v1460_v25  ;;  %v340_v40 = vrot.slane %v339_v36, 4  ;;  %v349_v41 = vrot.slane %v348_v37, 4 }
  0xe4   : > { %vm387_vm3 = vcmp.ge.s32.totalorder %v1522_v28, 2  ;;  %vm402_vm5 = vcmp.ge.s32.totalorder %v1522_v28, 1  ;;  %vm372_vm8 = vcmp.ge.s32.totalorder %v1522_v28, 3  ;;  %vm432_vm15 = vcmp.lt.s32.totalorder %v1522_v28, 14 }
  0xe5   : > { %v319_v42 = vrot.slane %v318_v38, 4  ;;  %v328_v43 = vrot.slane %v327_v39, 4  ;;  %v341_v44 = vmax.f32 %v339_v36, %v340_v40  ;;  %v350_v45 = vmax.f32 %v348_v37, %v349_v41 }
  0xe7   : > { %v320_v46 = vadd.f32 %v319_v42, %v318_v38  ;;  %v329_v47 = vadd.f32 %v328_v43, %v327_v39  ;;  %v342_v48 = vrot.slane %v341_v44, 2  ;;  %v351_v49 = vrot.slane %v350_v45, 2 }
  0xe9   : > { %v321_v50 = vrot.slane %v320_v46, 2  ;;  %v330_v51 = vrot.slane %v329_v47, 2  ;;  %v343_v52 = vmax.f32 %v341_v44, %v342_v48  ;;  %v352_v53 = vmax.f32 %v350_v45, %v351_v49 }
  0xeb   : > { %v322_v54 = vadd.f32 %v321_v50, %v320_v46  ;;  %v331_v55 = vadd.f32 %v330_v51, %v329_v47  ;;  %v344_v58 = vrot.slane %v343_v52, 1  ;;  %v353_v59 = vrot.slane %v352_v53, 1 }
  0xed   : > { %v323_v56 = vrot.slane %v322_v54, 1  ;;  %v332_v57 = vrot.slane %v331_v55, 1  ;;  %v345_v62 = vmax.f32 %v343_v52, %v344_v58  ;;  %v354_v63 = vmax.f32 %v352_v53, %v353_v59 }
  0xef   : > { %v324_v60 = vadd.f32 %v323_v56, %v322_v54  ;;  %v333_v61 = vadd.f32 %v332_v57, %v331_v55 }
  0xf1   : > { %v336_v0 = vmul.f32 0.03125, %v333_v61  ;;  %v335_v1 = vmul.f32 0.03125, %v324_v60 }
  0xf3   : > { %v1482_v2 = vsel %vm355_vm0, %v336_v0, %v354_v63  ;;  %v1484_v3 = vsel %vm355_vm0, %v335_v1, %v345_v62 }
  0xf4   : > { %382 = vrot.lane.b32.xlu1 %v1482_v2, %s1200_s12  ;;  %380 = vrot.lane.b32.xlu0 %v1484_v3, %s1200_s12  ;;  %v469_v49 = vrot.slane %v1484_v3, 2  ;;  %v470_v56 = vrot.slane %v1482_v2, 2  ;;  %s834_s12 = sshll.u32 %s270_s7, 4  ;;  %s1787_s12 = int_to_ptr.vmem [resolvable:$true] %s834_s12 }
  0xf5   : > { %s1122_s30 = scalar_lea.vmem %s1787_s12, 1024 }
  0xf6   : > { %p1123_p1 = scmp.ne.s32.totalorder %s1787_s12, %s1122_s30 }
  0xf8   : > { %427 = vrot.lane.b32.xlu1 %v1482_v2, %s1201_s14  ;;  %425 = vrot.lane.b32.xlu0 %v1484_v3, %s1201_s14  ;;  %p1124_p10 = pnand %p1123_p1, %p1846_p12 }
  0xfa   : > { %p1125_p5 = pneg %p1124_p10 }
  0xfc   : > { %397 = vrot.lane.b32.xlu1 %v1482_v2, %s1202_s11  ;;  %395 = vrot.lane.b32.xlu0 %v1484_v3, %s1202_s11 }
 0x100   : > { %442 = vrot.lane.b32.xlu1 %v1482_v2, %s1203_s23  ;;  %440 = vrot.lane.b32.xlu0 %v1484_v3, %s1203_s23  ;;  %s1785_s23 = scalar_lea.hbm %s1836_s4, %s967_s5 }
 0x104   : > { %367 = vrot.lane.b32.xlu1 %v1482_v2, %s1204_s29  ;;  %365 = vrot.lane.b32.xlu0 %v1484_v3, %s1204_s29  ;;  %s1217_s29 = smov [#allocation7]  }
 0x108   : > { %571 = vperm.xlu1 %1044, %v1433_v5   ;;  %410 = vrot.lane.b32.xlu0 %v1484_v3, %s1205_s20 }
 0x10c   : > { %412 = vrot.lane.b32.xlu1 %v1482_v2, %s1205_s20  ;;  %567 = vperm.xlu0 %1043, %v1438_v6   ;;  %s1126_s20 = sshll.u32 %s1217_s29, 4  ;;  %s1127_s20 = int_to_ptr.vmem [resolvable:$false] %s1126_s20 }
 0x10d   : > { %1045 = vset.pattern.permute.xlu1 %v1206_v4  ;;  %p1129_p7 = scmp.lt.s32.totalorder %s1787_s12, %s1127_s20 }
 0x110   : > { %606 = vperm.xlu1 %1045, %v1438_v6   ;;  %1046 = vset.pattern.permute.xlu0 %v1206_v4 }
 0x111   : > { %610 = vperm.xlu0 %1046, %v1433_v5  }
 0x114   : > { %1047 = vset.pattern.permute.xlu1 %v1207_v7 }
 0x115   : > { %622 = vperm.xlu1 %1047, %v1438_v6   ;;  %1048 = vset.pattern.permute.xlu0 %v1208_v8 }
 0x116   : > { %661 = vperm.xlu0 %1048, %v1438_v6  }
 0x119   : > { %626 = vperm.xlu1 %1047, %v1433_v5  }
 0x11a   : > { %1051 = vset.pattern.permute.xlu0 %v1209_v9 }
 0x11b   : > { %704 = vperm.xlu0 %1051, %v1433_v5  }
 0x11d   : > { %1049 = vset.pattern.permute.xlu1 %v1208_v8 }
 0x11e   : > { %665 = vperm.xlu1 %1049, %v1433_v5  }
 0x11f   : > { %1053 = vset.pattern.permute.xlu0 %v1210_v10 }
 0x122   : > { %1050 = vset.pattern.permute.xlu1 %v1209_v9 }
 0x123   : > { %700 = vperm.xlu1 %1050, %v1438_v6  }
 0x127   : > { %1052 = vset.pattern.permute.xlu1 %v1210_v10 }
 0x128   : > { %739 = vperm.xlu1 %1052, %v1438_v6   ;;  %v1525_v6 = vshra.s32 %v1519_v21, 4 }
 0x12a   : > { %vm388_vm4 = vcmp.ge.s32.totalorder %v1525_v6, 2  ;;  %vm403_vm6 = vcmp.ge.s32.totalorder %v1525_v6, 1  ;;  %vm373_vm9 = vcmp.ge.s32.totalorder %v1525_v6, 3  ;;  %vm433_vm0 = vcmp.lt.s32.totalorder %v1525_v6, 14 }
 0x12c   : > { %743 = vperm.xlu1 %1052, %v1433_v5  }
 0x166   : > { %v383_v19 = vpop.permute.xlu1 %382  ;;  %v381_v20 = vpop.permute.xlu0 %380 }
 0x167   : > { %v386_v30 = vsel %vm384_vm1, %v383_v19, %v381_v20  ;;  %v385_v31 = vsel %vm384_vm1, %v381_v20, %v383_v19  ;;  %vm447_vm1 = vcmp.lt.s32.totalorder %v1522_v28, 13 }
 0x168   : > { %v393_v35 = vsel %vm387_vm3, %v386_v30, 0.0  ;;  %v394_v36 = vsel %vm388_vm4, %v385_v31, 0.0  ;;  %vm414_vm3 = vcmp.lt.s32.totalorder %v1516_v14, 112  ;;  %vm417_vm4 = vcmp.lt.s32.totalorder %v1522_v28, 15 }
 0x169   : > { %v457_v39 = vrot.slane %v393_v35, 6  ;;  %v458_v42 = vrot.slane %v394_v36, 6 }
 0x16a   : > { %v428_v22 = vpop.permute.xlu1 %427  ;;  %v426_v23 = vpop.permute.xlu0 %425 }
 0x16b   : > { %v430_v58 = vsel %vm429_vm13, %v426_v23, %v428_v22  ;;  %v431_v59 = vsel %vm429_vm13, %v428_v22, %v426_v23 }
 0x16c   : > { %v438_v62 = vsel %vm432_vm15, %v430_v58, 0.0  ;;  %v439_v63 = vsel %vm433_vm0, %v431_v59, 0.0  ;;  %vm645_vm15 = vcmp.lt.s32.totalorder %v1516_v14, 127 }
 0x16d   : > { %v475_v2 = vrot.slane %v438_v62, 6  ;;  %v476_v7 = vrot.slane %v439_v63, 6 }
 0x16e   : > { %v398_v5 = vpop.permute.xlu1 %397  ;;  %v396_v29 = vpop.permute.xlu0 %395 }
 0x16f   : > { %v401_v32 = vsel %vm399_vm2, %v398_v5, %v396_v29  ;;  %v400_v37 = vsel %vm399_vm2, %v396_v29, %v398_v5  ;;  %vm448_vm2 = vcmp.lt.s32.totalorder %v1525_v6, 13 }
 0x170   : > { %v408_v38 = vsel %vm402_vm5, %v401_v32, 0.0  ;;  %v409_v43 = vsel %vm403_vm6, %v400_v37, 0.0  ;;  %vm418_vm5 = vcmp.lt.s32.totalorder %v1525_v6, 15  ;;  %vm551_vm6 = vcmp.lt.s32.totalorder %v1516_v14, 2 }
 0x171   : > { %v463_v46 = vrot.slane %v408_v38, 4  ;;  %v464_v52 = vrot.slane %v409_v43, 4 }
 0x172   : > { %v443_v33 = vpop.permute.xlu1 %442  ;;  %v441_v34 = vpop.permute.xlu0 %440 }
 0x173   : > { %v445_v60 = vsel %vm444_vm14, %v441_v34, %v443_v33  ;;  %v446_v0 = vsel %vm444_vm14, %v443_v33, %v441_v34 }
 0x174   : > { %v453_v1 = vsel %vm447_vm1, %v445_v60, 0.0  ;;  %v454_v8 = vsel %vm448_vm2, %v446_v0, 0.0  ;;  %vm684_vm2 = vcmp.lt.s32.totalorder %v1516_v14, 126 }
 0x175   : > { %v481_v11 = vrot.slane %v453_v1, 4  ;;  %v482_v5 = vrot.slane %v454_v8, 4 }
 0x176   : > { %v368_v40 = vpop.permute.xlu1 %367  ;;  %v366_v41 = vpop.permute.xlu0 %365 }
 0x177   : > { %v370_v44 = vsel %vm369_vm7, %v366_v41, %v368_v40  ;;  %v371_v45 = vsel %vm369_vm7, %v368_v40, %v366_v41  ;;  %vm510_vm7 = vcmp.lt.s32.totalorder %v1516_v14, 3 }
 0x178   : > { %v378_v47 = vsel %vm372_vm8, %v371_v45, 0.0  ;;  %v379_v48 = vsel %vm373_vm9, %v370_v44, 0.0 }
 0x179   : > { %v486_v50 = vsel %vm485_vm10, %v378_v47, %v457_v39  ;;  %v487_v51 = vsel %vm485_vm10, %v379_v48, %v458_v42 }
 0x17a   : > { %v489_v53 = vsel %vm488_vm11, %v486_v50, %v463_v46  ;;  %v490_v55 = vsel %vm488_vm11, %v487_v51, %v464_v52  ;;  %v411_v3 = vpop.permute.xlu0 %410 }
 0x17b   : > { %v1541_v54 = vsel %vm491_vm12, %v489_v53, %v469_v49  ;;  %v493_v57 = vsel %vm491_vm12, %v490_v55, %v470_v56  ;;  %v1621_v55 = vand.u32 15, %v1519_v21 }
 0x17c   : > { %502 = vrot.lane.b32.xlu0 %v1541_v54, %s1211_s22 }
 0x17d   : > { %vm557_vm9 = vcmp.ge.s32.totalorder %v1621_v55, 2  ;;  %vm596_vm14 = vcmp.ge.s32.totalorder %v1621_v55, 1  ;;  %vm651_vm1 = vcmp.lt.s32.totalorder %v1621_v55, 15 }
 0x180   : > { %506 = vrot.lane.b32.xlu0 %v493_v57, %s1211_s22 }
 0x184   : > { %543 = vrot.lane.b32.xlu0 %v1541_v54, %s1212_s6 }
 0x187   : > { %v1556_v61 = vpop.permute.xlu1 %571 }
 0x188   : > { %547 = vrot.lane.b32.xlu0 %v493_v57, %s1212_s6 }
 0x18b   : > { %v413_v4 = vpop.permute.xlu1 %412  ;;  %v568_v35 = vpop.permute.xlu0 %567 }
 0x18c   : > { %v415_v9 = vsel %vm414_vm3, %v411_v3, %v413_v4  ;;  %v416_v10 = vsel %vm414_vm3, %v413_v4, %v411_v3 }
 0x18d   : > { %v423_v19 = vsel %vm417_vm4, %v415_v9, 0.0  ;;  %v424_v20 = vsel %vm418_vm5, %v416_v10, 0.0  ;;  %vm690_vm4 = vcmp.lt.s32.totalorder %v1621_v55, 14  ;;  %vm723_vm5 = vcmp.lt.s32.totalorder %v1516_v14, 125 }
 0x18e   : > { %v494_v22 = vsel %vm485_vm10, %v423_v19, %v475_v2  ;;  %v495_v23 = vsel %vm485_vm10, %v424_v20, %v476_v7 }
 0x18f   : > { %v496_v29 = vsel %vm488_vm11, %v494_v22, %v481_v11  ;;  %v1566_v28 = vpop.permute.xlu1 %606  ;;  %v497_v30 = vsel %vm488_vm11, %v495_v23, %v482_v5  ;;  %vm516_vm11 = vcmp.ge.s32.totalorder %v1621_v55, 3 }
 0x190   : > { %v1569_v6 = vsel %vm491_vm12, %v496_v29, 0.0  ;;  %v1576_v31 = vsel %vm491_vm12, %v497_v30, 0.0  ;;  %v1600_v36 = vpop.permute.xlu0 %610  ;;  %vm590_vm12 = vcmp.lt.s32.totalorder %v1516_v14, 1 }
 0x191   : > { %504 = vrot.lane.b32.xlu1 %v1569_v6, %s1211_s22  ;;  %584 = vrot.lane.b32.xlu0 %v1569_v6, %s1213_s9 }
 0x194   : > { %v623_v32 = vpop.permute.xlu1 %622 }
 0x195   : > { %v1579_v33 = vmul.f32 %v623_v32, %v1541_v54  ;;  %v1581_v34 = vmul.f32 %v623_v32, %v493_v57  ;;  %508 = vrot.lane.b32.xlu1 %v1576_v31, %s1211_s22  ;;  %588 = vrot.lane.b32.xlu0 %v1576_v31, %s1213_s9  ;;  %v1602_v37 = vpop.permute.xlu0 %661  ;;  %s1128_s22 = scalar_lea.vmem %s1127_s20, 2048 }
 0x196   : > { %p1130_p9 = scmp.lt.s32.totalorder %s1128_s22, %s1122_s30 }
 0x198   : > { %v1606_v39 = vpop.permute.xlu1 %626  ;;  %p1131_p11 = por %p1130_p9, %p1129_p7 }
 0x199   : > { %545 = vrot.lane.b32.xlu1 %v1569_v6, %s1212_s6  ;;  %637 = vrot.lane.b32.xlu0 %v1541_v54, %s1214_s8 }
 0x19a   : > { %v1604_v38 = vpop.permute.xlu0 %704  ;;  %p1132_p3 = pnand %p1131_p11, %p1125_p5 }
 0x19d   : > { %549 = vrot.lane.b32.xlu1 %v1576_v31, %s1212_s6  ;;  %641 = vrot.lane.b32.xlu0 %v493_v57, %s1214_s8  ;;  %v1608_v40 = vpop.permute.xlu1 %665 }
 0x1a1   : > { %582 = vrot.lane.b32.xlu1 %v1541_v54, %s1213_s9  ;;  %676 = vrot.lane.b32.xlu0 %v1541_v54, %s1215_s26 }
 0x1a2   : > { %v1610_v43 = vpop.permute.xlu1 %700 }
 0x1a5   : > { %586 = vrot.lane.b32.xlu1 %v493_v57, %s1213_s9  ;;  %680 = vrot.lane.b32.xlu0 %v493_v57, %s1215_s26 }
 0x1a7   : > { %v1612_v45 = vpop.permute.xlu1 %739 }
 0x1a9   : > { %639 = vrot.lane.b32.xlu1 %v1569_v6, %s1214_s8  ;;  %715 = vrot.lane.b32.xlu0 %v1541_v54, %s1216_s25  ;;  %v1618_v54 = vand.u32 15, %v1516_v14 }
 0x1ab   : > { %v1614_v47 = vpop.permute.xlu1 %743  ;;  %vm556_vm8 = vcmp.ge.s32.totalorder %v1618_v54, 2  ;;  %vm515_vm10 = vcmp.ge.s32.totalorder %v1618_v54, 3  ;;  %vm595_vm13 = vcmp.ge.s32.totalorder %v1618_v54, 1  ;;  %vm650_vm0 = vcmp.lt.s32.totalorder %v1618_v54, 15 }
 0x1ac   : > { %vm689_vm3 = vcmp.lt.s32.totalorder %v1618_v54, 14 }
 0x1ad   : > { %643 = vrot.lane.b32.xlu1 %v1576_v31, %s1214_s8  ;;  %719 = vrot.lane.b32.xlu0 %v493_v57, %s1216_s25 }
 0x1b1   : > { %678 = vrot.lane.b32.xlu1 %v1569_v6, %s1215_s26 }
 0x1b5   : > { %682 = vrot.lane.b32.xlu1 %v1576_v31, %s1215_s26 }
 0x1b9   : > { %717 = vrot.lane.b32.xlu1 %v1569_v6, %s1216_s25 }
 0x1bd   : > { %721 = vrot.lane.b32.xlu1 %v1576_v31, %s1216_s25 }
 0x1ee   : > { %v503_v41 = vpop.permute.xlu0 %502 }
 0x1f2   : > { %v507_v42 = vpop.permute.xlu0 %506 }
 0x1f3   : > { %v511_v21 = vsel %vm510_vm7, %v503_v41, %v507_v42  ;;  %v513_v60 = vsel %vm510_vm7, %v507_v42, %v503_v41 }
 0x1f4   : > { %v521_v1 = vsel %vm515_vm10, %v513_v60, 0.0  ;;  %v522_v2 = vsel %vm516_vm11, %v511_v21, 0.0 }
 0x1f5   : > { %v535_v9 = vmul.f32 %v1514_v13, %v521_v1  ;;  %v536_v10 = vmul.f32 %v1514_v13, %v522_v2  ;;  %v631_v2 = vmul.f32 %v1606_v39, %v1569_v6 }
 0x1f6   : > { %v544_v44 = vpop.permute.xlu0 %543 }
 0x1fa   : > { %v548_v46 = vpop.permute.xlu0 %547 }
 0x1fb   : > { %v552_v58 = vsel %vm551_vm6, %v544_v44, %v548_v46  ;;  %v554_v59 = vsel %vm551_vm6, %v548_v46, %v544_v44 }
 0x1fc   : > { %v562_v62 = vsel %vm556_vm8, %v554_v59, 0.0  ;;  %v563_v63 = vsel %vm557_vm9, %v552_v58, 0.0 }
 0x1fd   : > { %v574_v4 = vmul.f32 %v568_v35, %v562_v62  ;;  %v575_v7 = vmul.f32 %v568_v35, %v563_v63 }
 0x1ff   : > { %v578_v23 = vadd.f32 %v574_v4, %v535_v9  ;;  %v579_v5 = vadd.f32 %v575_v7, %v536_v10 }
 0x203   : > { %v505_v48 = vpop.permute.xlu1 %504  ;;  %v585_v49 = vpop.permute.xlu0 %584 }
 0x207   : > { %v509_v50 = vpop.permute.xlu1 %508  ;;  %v589_v51 = vpop.permute.xlu0 %588 }
 0x208   : > { %v512_v46 = vsel %vm510_vm7, %v505_v48, %v509_v50  ;;  %v514_v58 = vsel %vm510_vm7, %v509_v50, %v505_v48  ;;  %v592_v60 = vsel %vm590_vm12, %v585_v49, %v589_v51  ;;  %v594_v62 = vsel %vm590_vm12, %v589_v51, %v585_v49 }
 0x209   : > { %v523_v48 = vsel %vm515_vm10, %v514_v58, 0.0  ;;  %v524_v50 = vsel %vm516_vm11, %v512_v46, 0.0  ;;  %v632_v49 = vmul.f32 %v1606_v39, %v1576_v31  ;;  %v604_v6 = vsel %vm596_vm14, %v592_v60, 0.0 }
 0x20a   : > { %v538_v51 = vmul.f32 %v1512_v12, %v524_v50  ;;  %vm729_vm7 = vcmp.lt.s32.totalorder %v1621_v55, 13 }
 0x20b   : > { %v546_v52 = vpop.permute.xlu1 %545  ;;  %v638_v53 = vpop.permute.xlu0 %637 }
 0x20f   : > { %v550_v56 = vpop.permute.xlu1 %549  ;;  %v642_v57 = vpop.permute.xlu0 %641 }
 0x210   : > { %v553_v13 = vsel %vm551_vm6, %v546_v52, %v550_v56  ;;  %v555_v32 = vsel %vm551_vm6, %v550_v56, %v546_v52  ;;  %v646_v63 = vsel %vm645_vm15, %v638_v53, %v642_v57  ;;  %vm728_vm6 = vcmp.lt.s32.totalorder %v1618_v54, 13 }
 0x211   : > { %v565_v59 = vsel %vm557_vm9, %v553_v13, 0.0  ;;  %v656_v4 = vsel %vm650_vm0, %v646_v63, 0.0 }
 0x213   : > { %v583_v0 = vpop.permute.xlu1 %582  ;;  %v677_v3 = vpop.permute.xlu0 %676 }
 0x217   : > { %v587_v8 = vpop.permute.xlu1 %586  ;;  %v681_v35 = vpop.permute.xlu0 %680 }
 0x218   : > { %v591_v11 = vsel %vm590_vm12, %v583_v0, %v587_v8  ;;  %v593_v19 = vsel %vm590_vm12, %v587_v8, %v583_v0  ;;  %v648_v0 = vsel %vm645_vm15, %v642_v57, %v638_v53  ;;  %v603_v57 = vsel %vm595_vm13, %v594_v62, 0.0 }
 0x219   : > { %v601_v20 = vsel %vm595_vm13, %v593_v19, 0.0  ;;  %v602_v22 = vsel %vm596_vm14, %v591_v11, 0.0  ;;  %v657_v7 = vsel %vm651_vm1, %v648_v0, 0.0  ;;  %v685_v9 = vsel %vm684_vm2, %v677_v3, %v681_v35 }
 0x21a   : > { %v613_v29 = vmul.f32 %v1566_v28, %v601_v20  ;;  %v614_v30 = vmul.f32 %v1566_v28, %v602_v22  ;;  %v564_v28 = vsel %vm556_vm8, %v555_v32, 0.0  ;;  %v687_v10 = vsel %vm684_vm2, %v681_v35, %v677_v3 }
 0x21b   : > { %v640_v41 = vpop.permute.xlu1 %639  ;;  %v716_v1 = vpop.permute.xlu0 %715  ;;  %v615_v11 = vmul.f32 %v1600_v36, %v603_v57  ;;  %v616_v19 = vmul.f32 %v1600_v36, %v604_v6  ;;  %v668_v20 = vmul.f32 %v1602_v37, %v656_v4  ;;  %v669_v22 = vmul.f32 %v1602_v37, %v657_v7 }
 0x21c   : > { %v617_v42 = vadd.f32 %v613_v29, %v578_v23  ;;  %v618_v44 = vadd.f32 %v614_v30, %v579_v5  ;;  %v695_v35 = vsel %vm689_vm3, %v685_v9, 0.0  ;;  %v696_v37 = vsel %vm690_vm4, %v687_v10, 0.0 }
 0x21e   : > { %v633_v52 = vadd.f32 %v1579_v33, %v617_v42  ;;  %v634_v56 = vadd.f32 %v1581_v34, %v618_v44  ;;  %v576_v33 = vmul.f32 %v1556_v61, %v564_v28  ;;  %v577_v34 = vmul.f32 %v1556_v61, %v565_v59 }
 0x21f   : > { %v644_v21 = vpop.permute.xlu1 %643  ;;  %v537_v61 = vmul.f32 %v1512_v12, %v523_v48  ;;  %v720_v23 = vpop.permute.xlu0 %719 }
 0x220   : > { %v581_v39 = vadd.f32 %v577_v34, %v538_v51  ;;  %v647_v12 = vsel %vm645_vm15, %v640_v41, %v644_v21  ;;  %v649_v8 = vsel %vm645_vm15, %v644_v21, %v640_v41  ;;  %v673_v41 = vadd.f32 %v669_v22, %v634_v56 }
 0x221   : > { %v580_v31 = vadd.f32 %v576_v33, %v537_v61  ;;  %v658_v29 = vsel %vm650_vm0, %v647_v12, 0.0  ;;  %v659_v3 = vsel %vm651_vm1, %v649_v8, 0.0  ;;  %v672_v42 = vadd.f32 %v668_v20, %v633_v52 }
 0x222   : > { %v620_v36 = vadd.f32 %v616_v19, %v581_v39  ;;  %v724_v44 = vsel %vm723_vm5, %v716_v1, %v720_v23  ;;  %v726_v46 = vsel %vm723_vm5, %v720_v23, %v716_v1  ;;  %v670_v58 = vmul.f32 %v1608_v40, %v658_v29 }
 0x223   : > { %v679_v53 = vpop.permute.xlu1 %678  ;;  %v619_v32 = vadd.f32 %v615_v11, %v580_v31  ;;  %v671_v28 = vmul.f32 %v1608_v40, %v659_v3  ;;  %v707_v56 = vmul.f32 %v1610_v43, %v695_v35  ;;  %v708_v52 = vmul.f32 %v1610_v43, %v696_v37 }
 0x224   : > { %v636_v60 = vadd.f32 %v632_v49, %v620_v36  ;;  %v734_v62 = vsel %vm728_vm6, %v724_v44, 0.0  ;;  %v735_v33 = vsel %vm729_vm7, %v726_v46, 0.0  ;;  %v790_v46 = vld [vmem:[%s1419_s13 + $0x10] sm:$0xff] }
 0x225   : > { %v635_v50 = vadd.f32 %v631_v2, %v619_v32  ;;  %v711_v63 = vadd.f32 %v707_v56, %v672_v42  ;;  %v712_v0 = vadd.f32 %v708_v52, %v673_v41  ;;  %v747_v43 = vmul.f32 %v1612_v45, %v735_v33  ;;  %v788_v41 = vld [vmem:[%s1419_s13] sm:$0xff]  ;;  %v789_v42 = vld [vmem:[%s1419_s13 + $0x8] sm:$0xff] }
 0x226   : > { %v675_v61 = vadd.f32 %v671_v28, %v636_v60  ;;  %v794_v28 = vld [vmem:[%s1419_s13 + $0x30] sm:$0xff]  ;;  %v793_v60 = vld [vmem:[%s1419_s13 + $0x28] sm:$0xff] }
 0x227   : > { %v683_v5 = vpop.permute.xlu1 %682  ;;  %v674_v1 = vadd.f32 %v670_v58, %v635_v50  ;;  %v792_v58 = vld [vmem:[%s1419_s13 + $0x20] sm:$0xff]  ;;  %v791_v50 = vld [vmem:[%s1419_s13 + $0x18] sm:$0xff] }
 0x228   : > { %v686_v30 = vsel %vm684_vm2, %v679_v53, %v683_v5  ;;  %v688_v13 = vsel %vm684_vm2, %v683_v5, %v679_v53  ;;  %v746_v53 = vmul.f32 %v1612_v45, %v734_v62  ;;  %v751_v45 = vadd.f32 %v747_v43, %v712_v0  ;;  %v795_v62 = vld [vmem:[%s1419_s13 + $0x38] sm:$0xff] }
 0x229   : > { %v697_v59 = vsel %vm689_vm3, %v686_v30, 0.0  ;;  %v698_v21 = vsel %vm690_vm4, %v688_v13, 0.0 }
 0x22a   : > { %v709_v40 = vmul.f32 %v1604_v38, %v697_v59  ;;  %v710_v34 = vmul.f32 %v1604_v38, %v698_v21  ;;  %v750_v39 = vadd.f32 %v746_v53, %v711_v63 }
 0x22b   : > { %v718_v48 = vpop.permute.xlu1 %717 }
 0x22c   : > { %v713_v6 = vadd.f32 %v709_v40, %v674_v1  ;;  %v714_v4 = vadd.f32 %v710_v34, %v675_v61 }
 0x22f   : > { %v722_v51 = vpop.permute.xlu1 %721 }
 0x230   : > { %v725_v2 = vsel %vm723_vm5, %v718_v48, %v722_v51  ;;  %v727_v49 = vsel %vm723_vm5, %v722_v51, %v718_v48 }
 0x231   : > { %v736_v57 = vsel %vm728_vm6, %v725_v2, 0.0  ;;  %v737_v38 = vsel %vm729_vm7, %v727_v49, 0.0 }
 0x232   : > { %v748_v7 = vmul.f32 %v1614_v47, %v736_v57  ;;  %v749_v31 = vmul.f32 %v1614_v47, %v737_v38 }
 0x234   : > { %v752_v12 = vadd.f32 %v748_v7, %v713_v6  ;;  %v753_v8 = vadd.f32 %v749_v31, %v714_v4 }
 0x236   : > { %v754_v9 = vadd.f32 %v752_v12, %v750_v39  ;;  %v761_v10 = vadd.f32 %v753_v8, %v751_v45 }
 0x238   : > { %v755_v14 = vrot.slane %v754_v9, 4  ;;  %v762_v11 = vrot.slane %v761_v10, 4 }
 0x23a   : > { %v756_v19 = vadd.f32 %v755_v14, %v754_v9  ;;  %v763_v54 = vadd.f32 %v762_v11, %v761_v10 }
 0x23c   : > { %v757_v20 = vrot.slane %v756_v19, 2  ;;  %v764_v22 = vrot.slane %v763_v54, 2 }
 0x23e   : > { %v758_v55 = vadd.f32 %v757_v20, %v756_v19  ;;  %v765_v23 = vadd.f32 %v764_v22, %v763_v54 }
 0x240   : > { %v759_v5 = vrot.slane %v758_v55, 1  ;;  %v766_v29 = vrot.slane %v765_v23, 1 }
 0x242   : > { %v760_v47 = vadd.f32 %v759_v5, %v758_v55  ;;  %v767_v3 = vadd.f32 %v766_v29, %v765_v23 }
 0x244   : > { %v957_v30 = vmul.f32 -1.442695, %v760_v47  ;;  %v958_v13 = vmul.f32 -1.442695, %v767_v3 }
 0x246   : > { %1054 = vpow2.f32 %v957_v30 }
 0x247   : > { %1056 = vpow2.f32 %v958_v13 }
 0x250   : > { %v1055_v32 = vpop.eup %1054 }
 0x251   : > { %v1057_v36 = vpop.eup %1056  ;;  %v774_v35 = vadd.f32 1.0, %v1055_v32 }
 0x252   : > { %v775_v37 = vadd.f32 1.0, %v1057_v36 }
 0x253   : > { %1058 = vrcp.f32 %v774_v35 }
 0x254   : > { %1060 = vrcp.f32 %v775_v37 }
 0x25d   : > { %v1059_v44 = vpop.eup %1058 }
 0x25e   : > { %v1061_v59 = vpop.eup %1060  ;;  %v780_v21 = vmul.f32 %v1059_v44, %v1451_v17  ;;  %v782_v48 = vmul.f32 %v1059_v44, %v1462_v26  ;;  %v784_v56 = vmul.f32 %v1059_v44, %v1447_v15  ;;  %v786_v52 = vmul.f32 %v1059_v44, %v1458_v24 }
 0x25f   : > { %v781_v33 = vmul.f32 %v1061_v59, %v1453_v18  ;;  %v783_v40 = vmul.f32 %v1061_v59, %v1464_v27  ;;  %v785_v34 = vmul.f32 %v1061_v59, %v1449_v16  ;;  %v787_v63 = vmul.f32 %v1061_v59, %v1460_v25 }
 0x260   : > { %v796_v17 = vadd.f32 %v788_v41, %v780_v21  ;;  %v798_v0 = vadd.f32 %v790_v46, %v782_v48  ;;  %v800_v1 = vadd.f32 %v792_v58, %v784_v56  ;;  %v802_v26 = vadd.f32 %v794_v28, %v786_v52 }
 0x261   : > { %v797_v15 = vadd.f32 %v789_v42, %v781_v33  ;;  %v799_v24 = vadd.f32 %v791_v50, %v783_v40  ;;  %v801_v61 = vadd.f32 %v793_v60, %v785_v34  ;;  %v803_v51 = vadd.f32 %v795_v62, %v787_v63 }
 0x262   : > { %v804_v53 = vmax.f32 %v796_v17, 0.0  ;;  %v806_v43 = vmax.f32 %v798_v0, 0.0  ;;  %v808_v18 = vmax.f32 %v800_v1, 0.0  ;;  %v810_v27 = vmax.f32 %v802_v26, 0.0 }
 0x263   : > { %v805_v16 = vmax.f32 %v797_v15, 0.0  ;;  %v807_v25 = vmax.f32 %v799_v24, 0.0  ;;  %v809_v2 = vmax.f32 %v801_v61, 0.0  ;;  %v811_v49 = vmax.f32 %v803_v51, 0.0 }
 0x264   : > { %812 = vst [vmem:[%s270_s7] sm:$0xff] %v804_v53  ;;  %814 = vst [vmem:[%s270_s7 + $0x10] sm:$0xff] %v806_v43 }
 0x265   : > { %816 = vst [vmem:[%s270_s7 + $0x20] sm:$0xff] %v808_v18  ;;  %818 = vst [vmem:[%s270_s7 + $0x30] sm:$0xff] %v810_v27 }
 0x266   : > { %813 = vst [vmem:[%s270_s7 + $0x8] sm:$0xff] %v805_v16  ;;  %815 = vst [vmem:[%s270_s7 + $0x18] sm:$0xff] %v807_v25 }
 0x267   : > { %817 = vst [vmem:[%s270_s7 + $0x28] sm:$0xff] %v809_v2  ;;  %819 = vst [vmem:[%s270_s7 + $0x38] sm:$0xff] %v811_v49 }
 0x268   : > { %1135 = shalt.err (!%p1132_p3)
}
 0x269   : > { %s1136_s6 = scalar_lea.hbm %s1785_s23, 1024  ;;  %s1140_s26 = scalar_lea.hbm %s1836_s4, 2048 }
 0x26a   : > { %p1137_p8 = scmp.ne.s32.totalorder %s1785_s23, %s1136_s6  ;;  %p1141_p4 = scmp.lt.u32.totalorder %s1785_s23, %s1836_s4 }
 0x26b   : > { %p1142_p6 = scmp.lt.u32.totalorder %s1140_s26, %s1136_s6  ;;  %p1144_p1 = scmp.lt.u32.totalorder %s1136_s6, %s1785_s23 }
 0x26c   : > { %p1138_p0 = pnand %p1137_p8, %p1846_p12 }
 0x26d   : > { %p1143_p13 = por %p1142_p6, %p1141_p4 }
 0x26e   : > { %p1139_p2 = pneg %p1138_p0 }
 0x26f   : > { %p1145_p10 = por %p1144_p1, %p1143_p13 }
 0x271   : > { %p1146_p5 = pnand %p1145_p10, %p1139_p2 }
 0x273   : > { %1149 = shalt.err (!%p1146_p5)
}
 0x274   : > { %s1218_s7 = smov 256  }
 0x275   : > { %972 = dma.vmem_to_hbm [thread:$0]  (%p1846_p12), %s1787_s12, 1024, %s1785_s23, %s821_s19, %s1218_s7, %s1218_s7, %s1202_s11  }
 0x276 PF: > { %s849_s13 = sand.u32 1, %s1180_s15   ;;  %p1847_p7 = scmp.ne.s32.totalorder %s1842_s28, 0 }
 0x277   : > { %p1848_p9 = scmp.ge.s32.totalorder %s1192_s18, 2  ;;  %s850_s14 = scalar_lea.sflag [#allocation4], %s849_s13 }
 0x279   : > { %p982_p11 = pnand %p1848_p9, %p1847_p7 }
 0x27b   : > { %1175 = dma.done.wait (!%p982_p11), %s850_s14, 1024  }
 0x27c   : > { %1177 = vsyncadd (!%p982_p11), %s850_s14, 4294966272  ;;  %p20_p3 = scmp.ge.s32.totalorder %s1269_s21, 4   ;;  %s1849_s15 = smov %s1184_s16 }
 0x27d   : > { %s1850_s16 = smov %s1188_s17  ;;  %s1851_s17 = smov %s1281_s24 }
 0x27e   : > { %s1852_s18 = smov %s1269_s21  ;;  %22 = sbr.rel (!%p20_p3) target bundleno = 7 (0x7), region = 97 }
 0x285   :  { %855 = vsyncpa [#allocation3], 1 }
 0x286   :  { %857 = vsyncpa [#allocation3 + $0x1], 1 }
 0x287   :  { %858 = vsyncpa [#allocation6], 1 }
 0x288   :  { %860 = vsyncpa [#allocation6 + $0x1], 1 }
 0x289   :  { %861 = vsyncpa [#allocation4], 1 }
 0x28a   :  { %863 = vsyncpa [#allocation4 + $0x1], 1 }

</bundles_post_ra>
